<compile_context>
chip_gen: v5e
topology: v5e:2x2
jax: 0.10.0
libtpu: 0.0.40
codegen_flags: <defaults>
</compile_context>

<pallas_src>
import functools

import jax
import jax.numpy as jnp
from jax.experimental import pallas as pl
from jax.experimental.pallas import tpu as pltpu


def _conv1x1_sigmoid_kernel(w_ref, x_ref, b_ref, o_ref, *, approx_sigmoid=False):
    # w_ref: (C_out, C_in)        resident weights
    # x_ref: (nb, C_in, t_hw)     batched, lane-dense input tile
    # b_ref: (C_out, 1)           resident bias
    # o_ref: (nb, C_out, t_hw)    lane-dense output tile
    nb, c_in, _ = x_ref.shape
    b = b_ref[...].astype(jnp.float32)                       # (C_out, 1)

    def sigmoid(y):
        # exp (EUP) + reciprocal; approx=True routes the divide to the EUP vrcp
        # slot (useful on v7x where ~500 Gelem/s of sigmoid approaches EUP rate).
        return pl.reciprocal(1.0 + jnp.exp(-y), approx=approx_sigmoid)

    if c_in <= 8:
        # Tiny contraction: unrolled VPU broadcast-FMA on the lane-dense tile,
        # skipping MXU push/pop latency for a K<=8 matmul.  Compute is fully
        # hidden under the DMA (kernel is HBM-BW bound), so the per-k broadcasts
        # are free filler.
        w = w_ref[...].astype(jnp.float32)                    # (C_out, C_in)
        x = x_ref[...].astype(jnp.float32)                    # (nb, C_in, t_hw)
        y = b[None] + w[None, :, 0:1] * x[:, 0:1, :]
        for k in range(1, c_in):
            y = y + w[None, :, k:k + 1] * x[:, k:k + 1, :]
        o_ref[...] = sigmoid(y).astype(o_ref.dtype)
    else:
        # MXU path: native-dtype operands (no pre-upcast), f32 accumulation.
        w = w_ref[...]
        for i in range(nb):                                   # nb is small & static
            y = jnp.dot(w, x_ref[i], preferred_element_type=jnp.float32) + b
            o_ref[i] = sigmoid(y).astype(o_ref.dtype)


def stop_conv_forward(x, weight, bias, *, target_step_bytes=4 << 20,
                      approx_sigmoid=False):
    """stop_conv forward:  sigmoid(Conv2d(x, weight, bias, kernel_size=1)).

    x: (N, C_in, H, W); weight: (C_out, C_in, 1, 1); bias: (C_out,).
    """
    N, C_in, H, W = x.shape
    C_out = weight.shape[0]
    HW = H * W
    itemsize = jnp.dtype(x.dtype).itemsize

    # Free (contiguous) reshapes only -- no transposes.
    xr = x.reshape(N, C_in, HW)             # (N, C_in, HW)
    wm = weight.reshape(C_out, C_in)        # (C_out, C_in)
    bm = bias.reshape(C_out, 1)             # (C_out, 1)

    # ---- grid-step sizing -------------------------------------------------
    # Target ~target_step_bytes of (input + output) HBM bytes per grid step so
    # the ~0.35 us/step overhead is amortized (>=85-90% of HBM roofline); keep
    # at least 2 total steps when N > 1 so both TCs (v7x) / megacore get work.
    per_px = (C_in + C_out) * itemsize                       # in+out bytes / pixel / image
    tgt = int(min(max(target_step_bytes, 1), 24 << 20))      # keep 2x-buffered tiles < 56 MiB
    want_px = max(128, tgt // per_px)                        # (batch * pixels) per step

    if HW <= want_px:
        t_hw = HW                                            # full row: always layout-legal
    elif HW >= 128:
        t_hw = 128 * max(1, min(HW // 128, want_px // 128))  # lane-dense tile
    else:
        t_hw = HW
    grid_hw = pl.cdiv(HW, t_hw)

    nb = max(1, min(N, want_px // t_hw))                     # batch images per step
    if nb > 1 and pl.cdiv(N, nb) * grid_hw < 2:
        nb = pl.cdiv(N, 2)                                   # ensure >= 2 grid steps
    grid_n = pl.cdiv(N, nb)

    # ---- VMEM budget: double-buffered in+out tiles + resident params -------
    in_tile = nb * C_in * t_hw * itemsize
    out_tile = nb * C_out * t_hw * itemsize
    param_bytes = (C_out * C_in + C_out) * itemsize
    vmem_limit = int(min(max(2 * (in_tile + out_tile) + 2 * param_bytes + (4 << 20),
                             16 << 20),
                         56 << 20))                          # safe on v7x's 64 MiB

    cost = pl.CostEstimate(
        flops=2 * N * C_out * C_in * HW,
        transcendentals=N * C_out * HW,
        bytes_accessed=itemsize * (N * (C_in + C_out) * HW + C_out * (C_in + 1)),
    )

    kernel = functools.partial(_conv1x1_sigmoid_kernel, approx_sigmoid=approx_sigmoid)

    out = pl.pallas_call(
        kernel,
        out_shape=jax.ShapeDtypeStruct((N, C_out, HW), x.dtype),
        grid_spec=pltpu.PrefetchScalarGridSpec(
            num_scalar_prefetch=0,
            grid=(grid_n, grid_hw),
            in_specs=[
                pl.BlockSpec((C_out, C_in), lambda b, h: (0, 0)),           # W (resident)
                pl.BlockSpec((nb, C_in, t_hw), lambda b, h: (b, 0, h)),     # X tile
                pl.BlockSpec((C_out, 1), lambda b, h: (0, 0)),              # bias (resident)
            ],
            out_specs=pl.BlockSpec((nb, C_out, t_hw), lambda b, h: (b, 0, h)),
        ),
        compiler_params=pltpu.CompilerParams(
            dimension_semantics=("parallel", "parallel"),
            vmem_limit_bytes=vmem_limit,
        ),
        cost_estimate=cost,
    )(wm, xr, bm)

    return out.reshape(N, C_out, H, W)


def _reference(x, weight, bias):
    C_out, C_in = weight.shape[:2]
    return jax.nn.sigmoid(
        jnp.einsum("nchw,oc->nohw", x, weight.reshape(C_out, C_in))
        + bias[None, :, None, None]
    )


if __name__ == "__main__":
    key = jax.random.PRNGKey(0)

    def make_case(k, N, C_in, C_out, H, W):
        k_x, k_w, k_b = jax.random.split(k, 3)
        bound = 1.0 / (C_in ** 0.5)                # matches nn.Conv2d default init range
        x = jax.random.normal(k_x, (N, C_in, H, W), dtype=jnp.float32)
        w = jax.random.uniform(k_w, (C_out, C_in, 1, 1),
                               minval=-bound, maxval=bound, dtype=jnp.float32)
        b = jax.random.uniform(k_b, (C_out,),
                               minval=-bound, maxval=bound, dtype=jnp.float32)
        return x, w, b

    # (N, C_in, C_out, H, W) -- all small.  Cases exercise: the spec shape,
    # batch-packed VPU path (nb > 1), the MXU path (C_in > 8), and multi-tile
    # pixel tiling with a partial tail block.
    cases = [
        ((2, 4, 8, 16, 16), {}),
        ((8, 4, 8, 16, 16), {}),
        ((4, 16, 8, 16, 16), {}),
        ((2, 4, 8, 40, 40), dict(target_step_bytes=1)),
    ]
    keys = jax.random.split(key, len(cases))
    for k, (shape, kw) in zip(keys, cases):
        N, C_in, C_out, H, W = shape
        x, w, b = make_case(k, N, C_in, C_out, H, W)
        y = stop_conv_forward(x, w, b, **kw)
        jax.block_until_ready(y)
        y_ref = _reference(x, w, b)
        assert y.shape == (N, C_out, H, W)
        assert jnp.allclose(y, y_ref, atol=1e-5), f"mismatch vs reference for {shape}"

    print("KERNEL_OK")
</pallas_src>

<mosaic_0001>
module attributes {stable_mosaic.version = 11 : i64} {
  func.func @_conv1x1_sigmoid_kernel(%arg0: i32, %arg1: i32, %arg2: memref<8x4xf32, #tpu.memory_space<vmem>>, %arg3: memref<1x4x256xf32, #tpu.memory_space<vmem>>, %arg4: memref<8x1xf32, #tpu.memory_space<vmem>>, %arg5: memref<1x8x256xf32, #tpu.memory_space<vmem>>) attributes {dimension_semantics = [#tpu.dimension_semantics<parallel>, #tpu.dimension_semantics<parallel>], iteration_bounds = array<i64: 2, 1>, scalar_prefetch = 0 : i64, scratch_operands = 0 : i64, tpu.core_type = #tpu.core_type<tc>, window_params = [{pipeline_mode = #tpu.pipeline_mode<synchronous>, transform_indices = @transform_0, window_bounds = array<i64: 8, 4>}, {transform_indices = @transform_1, window_bounds = array<i64: 1, 4, 256>}, {pipeline_mode = #tpu.pipeline_mode<synchronous>, transform_indices = @transform_2, window_bounds = array<i64: 8, 1>}, {transform_indices = @transform_3, window_bounds = array<i64: 1, 8, 256>}]} {
    %c0 = arith.constant 0 : index
    %c0_0 = arith.constant 0 : index
    %0 = vector.load %arg4[%c0, %c0_0] : memref<8x1xf32, #tpu.memory_space<vmem>>, vector<8x1xf32>
    %c0_1 = arith.constant 0 : index
    %c0_2 = arith.constant 0 : index
    %1 = vector.load %arg2[%c0_1, %c0_2] : memref<8x4xf32, #tpu.memory_space<vmem>>, vector<8x4xf32>
    %c0_3 = arith.constant 0 : index
    %c0_4 = arith.constant 0 : index
    %c0_5 = arith.constant 0 : index
    %2 = vector.load %arg3[%c0_3, %c0_4, %c0_5] : memref<1x4x256xf32, #tpu.memory_space<vmem>>, vector<1x4x256xf32>
    %3 = vector.shape_cast %0 : vector<8x1xf32> to vector<1x8x1xf32>
    %4 = vector.extract_strided_slice %1 {offsets = [0, 0], sizes = [8, 1], strides = [1, 1]} : vector<8x4xf32> to vector<8x1xf32>
    %5 = vector.shape_cast %4 : vector<8x1xf32> to vector<1x8x1xf32>
    %6 = vector.extract_strided_slice %2 {offsets = [0, 0, 0], sizes = [1, 1, 256], strides = [1, 1, 1]} : vector<1x4x256xf32> to vector<1x1x256xf32>
    %7 = vector.broadcast %5 : vector<1x8x1xf32> to vector<1x8x256xf32>
    %8 = vector.broadcast %6 : vector<1x1x256xf32> to vector<1x8x256xf32>
    %9 = arith.mulf %7, %8 : vector<1x8x256xf32>
    %10 = vector.broadcast %3 : vector<1x8x1xf32> to vector<1x8x256xf32>
    %11 = arith.addf %10, %9 : vector<1x8x256xf32>
    %12 = vector.extract_strided_slice %1 {offsets = [0, 1], sizes = [8, 1], strides = [1, 1]} : vector<8x4xf32> to vector<8x1xf32>
    %13 = vector.shape_cast %12 : vector<8x1xf32> to vector<1x8x1xf32>
    %14 = vector.extract_strided_slice %2 {offsets = [0, 1, 0], sizes = [1, 1, 256], strides = [1, 1, 1]} : vector<1x4x256xf32> to vector<1x1x256xf32>
    %15 = vector.broadcast %13 : vector<1x8x1xf32> to vector<1x8x256xf32>
    %16 = vector.broadcast %14 : vector<1x1x256xf32> to vector<1x8x256xf32>
    %17 = arith.mulf %15, %16 : vector<1x8x256xf32>
    %18 = arith.addf %11, %17 : vector<1x8x256xf32>
    %19 = vector.extract_strided_slice %1 {offsets = [0, 2], sizes = [8, 1], strides = [1, 1]} : vector<8x4xf32> to vector<8x1xf32>
    %20 = vector.shape_cast %19 : vector<8x1xf32> to vector<1x8x1xf32>
    %21 = vector.extract_strided_slice %2 {offsets = [0, 2, 0], sizes = [1, 1, 256], strides = [1, 1, 1]} : vector<1x4x256xf32> to vector<1x1x256xf32>
    %22 = vector.broadcast %20 : vector<1x8x1xf32> to vector<1x8x256xf32>
    %23 = vector.broadcast %21 : vector<1x1x256xf32> to vector<1x8x256xf32>
    %24 = arith.mulf %22, %23 : vector<1x8x256xf32>
    %25 = arith.addf %18, %24 : vector<1x8x256xf32>
    %26 = vector.extract_strided_slice %1 {offsets = [0, 3], sizes = [8, 1], strides = [1, 1]} : vector<8x4xf32> to vector<8x1xf32>
    %27 = vector.shape_cast %26 : vector<8x1xf32> to vector<1x8x1xf32>
    %28 = vector.extract_strided_slice %2 {offsets = [0, 3, 0], sizes = [1, 1, 256], strides = [1, 1, 1]} : vector<1x4x256xf32> to vector<1x1x256xf32>
    %29 = vector.broadcast %27 : vector<1x8x1xf32> to vector<1x8x256xf32>
    %30 = vector.broadcast %28 : vector<1x1x256xf32> to vector<1x8x256xf32>
    %31 = arith.mulf %29, %30 : vector<1x8x256xf32>
    %32 = arith.addf %25, %31 : vector<1x8x256xf32>
    %cst = arith.constant 0.000000e+00 : f32
    %33 = vector.broadcast %cst : f32 to vector<1x8x256xf32>
    %34 = arith.subf %33, %32 : vector<1x8x256xf32>
    %35 = math.exp %34 : vector<1x8x256xf32>
    %cst_6 = arith.constant 1.000000e+00 : f32
    %36 = vector.broadcast %cst_6 : f32 to vector<1x8x256xf32>
    %37 = arith.addf %36, %35 : vector<1x8x256xf32>
    %38 = tpu.reciprocal %37 : vector<1x8x256xf32> -> vector<1x8x256xf32>
    %c0_7 = arith.constant 0 : index
    %c0_8 = arith.constant 0 : index
    %c0_9 = arith.constant 0 : index
    %39 = vector.load %arg5[%c0_7, %c0_8, %c0_9] : memref<1x8x256xf32, #tpu.memory_space<vmem>>, vector<1x8x256xf32>
    tpu.vector_store %arg5[%c0_7, %c0_8, %c0_9], %38 {strides = array<i32>} : memref<1x8x256xf32, #tpu.memory_space<vmem>>, vector<1x8x256xf32>,
    return
  }
  func.func @transform_0(%arg0: i32, %arg1: i32) -> (i32, i32) {
    %c0_i32 = arith.constant 0 : i32
    %c0_i32_0 = arith.constant 0 : i32
    %c0_i32_1 = arith.constant 0 : i32
    return %c0_i32, %c0_i32_0 : i32, i32
  }
  func.func @transform_1(%arg0: i32, %arg1: i32) -> (i32, i32, i32) {
    %c0_i32 = arith.constant 0 : i32
    %c0_i32_0 = arith.constant 0 : i32
    return %arg0, %c0_i32, %arg1 : i32, i32, i32
  }
  func.func @transform_2(%arg0: i32, %arg1: i32) -> (i32, i32) {
    %c0_i32 = arith.constant 0 : i32
    %c0_i32_0 = arith.constant 0 : i32
    %c0_i32_1 = arith.constant 0 : i32
    return %c0_i32, %c0_i32_0 : i32, i32
  }
  func.func @transform_3(%arg0: i32, %arg1: i32) -> (i32, i32, i32) {
    %c0_i32 = arith.constant 0 : i32
    %c0_i32_0 = arith.constant 0 : i32
    return %arg0, %c0_i32, %arg1 : i32, i32, i32
  }
}

</mosaic_0001>

<bundles_post_ra>
// kernel: tpu_custom_call.1
= control target key start
LH: loop header
LB: loop body
LE: loop exit
PB: predicated region body
PF: predicated region fallthrough
CT: control target
= control target key end

     0   :  { %8 = vsyncpa [#allocation3], 0  ;;  %s697_s0 = inlined_call_operand.vmem [shape: f32[8,4], index: 0, kind: input, shape index: {}]   ;;  %s698_s1 = inlined_call_operand.vmem [shape: f32[2,4,256], index: 1, kind: input, shape index: {}]   ;;  %s699_s2 = inlined_call_operand.vmem [shape: f32[8,1], index: 2, kind: input, shape index: {}]   ;;  %s700_s3 = inlined_call_operand.hbm [shape: f32[2,8,256], index: 3, kind: output, shape index: {}]  }
   0x1   :  { %10 = vsyncpa [#allocation3 + $0x1], 0  ;;  %s590_s12 = smov 0   ;;  %s592_s13 = smov 0  }
   0x2   :  { %s594_s14 = smov 0   ;;  %s596_s15 = smov 0  }
   0x3   :  { %s598_s16 = smov 0   ;;  %s600_s17 = smov 0  }
   0x4 LB: > { %s399_s18 = sadd.s32 4294967295, %s564_s17   ;;  %s400_s19 = sadd.s32 4294967294, %s564_s17   ;;  %s564_s17 = sphi %s600_s17, %s16_s17   ;;  %s560_s16 = sphi %s598_s16, %s707_s16   ;;  %s556_s15 = sphi %s596_s15, %s706_s15   ;;  %s552_s14 = sphi %s594_s14, %s705_s14   ;;  %s548_s13 = sphi %s592_s13, %s704_s13   ;;  %s544_s12 = sphi %s590_s12, %s703_s12  }
   0x5   : > { %s28_s20 = sadd.s32 1, %s560_s16  ;;  %s107_s21 = sadd.s32 1, %s552_s14 }
   0x6   : > { %p30_p0 = scmp.ge.s32.totalorder %s28_s20, 2  ;;  %p117_p1 = scmp.ne.s32.totalorder %s552_s14, %s548_s13 }
   0x7   : > { %p118_p2 = scmp.eq.s32.totalorder %s399_s18, 1  ;;  %p123_p3 = scmp.ne.s32.totalorder %s548_s13, %s544_s12 }
   0x8   : > { %s709_s20 = smov (%p30_p0, %s28_s20), 0  ;;  %p124_p5 = scmp.eq.s32.totalorder %s400_s19, 1 }
   0x9   : > { %p630_p4 = por %p118_p2, %p117_p1  ;;  %s102_s23 = ssub.s32 %s560_s16, %s709_s20 }
   0xa   : > { %p403_p6 = scmp.ge.s32.totalorder %s564_s17, 1  ;;  %p105_p7 = scmp.eq.s32.totalorder %s102_s23, 0 }
   0xb   : > { %p637_p8 = por %p124_p5, %p123_p3  ;;  %p161_p9 = scmp.lt.s32.totalorder %s564_s17, 3 }
   0xc   : > { %s643_s25 = scalar_select %p105_p7, %s552_s14, %s107_s21  }
   0xd   : > { %p162_p10 = pnand %p403_p6, %p161_p9 }
   0xe   : > { %p190_p11 = scmp.lt.s32.totalorder (!%p162_p10), %s556_s15, 1  ;;  %s186_s8 = sand.u32 (!%p162_p10), 1, %s548_s13  }
   0xf   : > { %165 = sbr.rel (%p162_p10) target bundleno = 187 (0xbb), region = 32  ;;  %s404_s9 = sshll.u32 (!%p162_p10), %s186_s8, 4 }
  0x10   : > { %s413_s10 = sshll.u32 (!%p162_p10), %s556_s15, 4  ;;  %s188_s21 = scalar_lea.vmem (!%p162_p10), [#allocation2], %s404_s9 }
  0x11   : > { %s318_s19 = scalar_lea.hbm (!%p162_p10), %s700_s3, %s413_s10  ;;  %s320_s23 = sshll.u32 (!%p162_p10), %s188_s21, 4  ;;  %s321_s23 = int_to_ptr.vmem [resolvable:$true] %s320_s23 }
  0x12   : > { %s305_s26 = scalar_lea.sflag (!%p162_p10), [#allocation3], %s186_s8 }
  0x14   : > { %v201_v0 = vld [vmem:[%s697_s0] sm:$0xff]  ;;  %v566_v1 = vmov 0   ;;  %v567_v2 = vmov 1   ;;  %v568_v3 = vmov 3   ;;  %v569_v5 = vmov 2   ;;  %s191_s30 = scalar_select %p190_p11, %s556_s15, 1 }
  0x15   : > { %473 = vset.pattern.permute.xlu0 %v566_v1  ;;  %474 = vset.pattern.permute.xlu1 %v567_v2  ;;  %v200_v4 = vld [vmem:[%s699_s2] sm:$0xff]  ;;  %s322_s15 = sshll.u32 %s318_s19, 4  ;;  %s323_s15 = int_to_ptr.hbm [resolvable:$true] %s322_s15 }
  0x16   : > { %205 = vperm.xlu0 %473, %v201_v0   ;;  %225 = vperm.xlu1 %474, %v201_v0   ;;  %s412_s4 = sshll.u32 %s191_s30, 3  ;;  %s500_s27 = sshra.s32 %s323_s15, 4  ;;  %s501_s27 = int_to_ptr.hbm [resolvable:$true] %s500_s27 }
  0x17   : > { %476 = vset.pattern.permute.xlu2 %v568_v3  ;;  %s197_s7 = scalar_lea.vmem %s698_s1, %s412_s4  ;;  %s502_s28 = scalar_lea.hbm %s501_s27, 16 }
  0x18   : > { %253 = vperm.xlu2 %476, %v201_v0   ;;  %v202_v6 = vld [vmem:[%s197_s7] sm:$0xff]  ;;  %p503_p12 = scmp.ne.s32.totalorder %s501_s27, %s502_s28  ;;  %s506_s4 = scalar_lea.hbm %s700_s3, 32 }
  0x19   : > { %v209_v7 = vperm.slane %v202_v6, 0  ;;  %v210_v8 = vperm.slane %v202_v6, 4  ;;  %v228_v11 = vperm.slane %v202_v6, 1  ;;  %v229_v12 = vperm.slane %v202_v6, 5  ;;  %p507_p1 = scmp.lt.s32.totalorder %s501_s27, %s700_s3  ;;  %p508_p2 = scmp.lt.s32.totalorder %s506_s4, %s502_s28 }
  0x1a   : > { %v242_v13 = vperm.slane %v202_v6, 2  ;;  %v243_v14 = vperm.slane %v202_v6, 6  ;;  %v256_v17 = vperm.slane %v202_v6, 3  ;;  %v257_v18 = vperm.slane %v202_v6, 7  ;;  %p504_p13 = pnand %p503_p12, %p630_p4 }
  0x1b   : > { %v213_v15 = vperm.slane %v209_v7, 0  ;;  %v214_v16 = vperm.slane %v210_v8, 0  ;;  %v232_v19 = vperm.slane %v228_v11, 1  ;;  %v233_v20 = vperm.slane %v229_v12, 1  ;;  %p509_p3 = por %p508_p2, %p507_p1 }
  0x1c   : > { %v246_v21 = vperm.slane %v242_v13, 2  ;;  %v247_v22 = vperm.slane %v243_v14, 2  ;;  %v260_v25 = vperm.slane %v256_v17, 3  ;;  %v261_v26 = vperm.slane %v257_v18, 3  ;;  %p505_p0 = pneg %p504_p13 }
  0x1e   : > { %219 = vperm.xlu0 %473, %v200_v4   ;;  %475 = vset.pattern.permute.xlu1 %v569_v5  ;;  %p510_p5 = pnand %p509_p3, %p505_p0 }
  0x1f   : > { %239 = vperm.xlu1 %475, %v201_v0  }
  0x26   : > { %477 = vset.pattern.permute.xlu0 %v568_v3 }
  0x72   : > { %v254_v28 = vpop.permute.xlu2 %253 }
  0x73   : > { %v262_v38 = vmul.f32 %v260_v25, %v254_v28  ;;  %v263_v39 = vmul.f32 %v261_v26, %v254_v28 }
  0x88   : > { %v206_v9 = vpop.permute.xlu0 %205  ;;  %v226_v10 = vpop.permute.xlu1 %225 }
  0x89   : > { %v215_v23 = vmul.f32 %v213_v15, %v206_v9  ;;  %v216_v24 = vmul.f32 %v214_v16, %v206_v9  ;;  %v234_v29 = vmul.f32 %v232_v19, %v226_v10  ;;  %v235_v30 = vmul.f32 %v233_v20, %v226_v10 }
  0x90   : > { %v220_v27 = vpop.permute.xlu0 %219 }
  0x91   : > { %v222_v31 = vadd.f32 %v220_v27, %v215_v23  ;;  %v223_v32 = vadd.f32 %v220_v27, %v216_v24  ;;  %v240_v33 = vpop.permute.xlu1 %239 }
  0x92   : > { %v248_v34 = vmul.f32 %v246_v21, %v240_v33  ;;  %v249_v35 = vmul.f32 %v247_v22, %v240_v33 }
  0x93   : > { %v236_v36 = vadd.f32 %v234_v29, %v222_v31  ;;  %v237_v37 = vadd.f32 %v235_v30, %v223_v32 }
  0x95   : > { %v250_v40 = vadd.f32 %v248_v34, %v236_v36  ;;  %v251_v41 = vadd.f32 %v249_v35, %v237_v37 }
  0x97   : > { %v264_v42 = vadd.f32 %v262_v38, %v250_v40  ;;  %v265_v43 = vadd.f32 %v263_v39, %v251_v41 }
  0x99   : > { %v266_v44 = vsub.f32 0.0, %v264_v42  ;;  %v267_v45 = vsub.f32 0.0, %v265_v43 }
  0x9b   : > { %v268_v46 = vmul.f32 1.442695, %v266_v44  ;;  %v270_v47 = vmul.f32 1.442695, %v267_v45 }
  0x9d   : > { %478 = vpow2.f32 %v268_v46 }
  0x9e   : > { %480 = vpow2.f32 %v270_v47 }
  0xa3   : > { %v479_v48 = vpop.eup %478 }
  0xa4   : > { %v481_v49 = vpop.eup %480  ;;  %v272_v50 = vadd.f32 1.0, %v479_v48 }
  0xa5   : > { %v273_v51 = vadd.f32 1.0, %v481_v49 }
  0xa6   : > { %482 = vrcp.f32 %v272_v50  ;;  %v285_v57 = vand.u32 2147483648, %v272_v50  ;;  %v283_v60 = vand.u32 2147483647, %v272_v50  ;;  %vm279_vm2 = vweird.f32 %v272_v50 }
  0xa7   : > { %484 = vrcp.f32 %v273_v51  ;;  %v299_v61 = vand.u32 2147483648, %v273_v51  ;;  %v297_v63 = vand.u32 2147483647, %v273_v51  ;;  %vm293_vm4 = vweird.f32 %v273_v51 }
  0xa8   : > { %v286_v1 = vor.u32 1.1754944e-38, %v285_v57  ;;  %vm284_vm5 = vcmp.eq.f32.partialorder %v283_v60, 8.507059e+37 }
  0xa9   : > { %v300_v4 = vor.u32 1.1754944e-38, %v299_v61  ;;  %vm298_vm7 = vcmp.eq.f32.partialorder %v297_v63, 8.507059e+37 }
  0xac   : > { %v483_v52 = vpop.eup %482 }
  0xad   : > { %v485_v53 = vpop.eup %484  ;;  %v275_v54 = vmul.f32 %v483_v52, %v272_v50  ;;  %vm280_vm0 = vweird.f32 %v483_v52 }
  0xae   : > { %v289_v55 = vmul.f32 %v485_v53, %v273_v51  ;;  %vm294_vm1 = vweird.f32 %v485_v53  ;;  %vm281_vm3 = vmor %vm279_vm2, %vm280_vm0 }
  0xaf   : > { %v276_v56 = vsub.f32 1.0, %v275_v54  ;;  %vm295_vm6 = vmor %vm293_vm4, %vm294_vm1 }
  0xb0   : > { %v290_v58 = vsub.f32 1.0, %v289_v55 }
  0xb1   : > { %v277_v59 = vmul.f32 %v483_v52, %v276_v56 }
  0xb2   : > { %v291_v62 = vmul.f32 %v485_v53, %v290_v58 }
  0xb3   : > { %v278_v0 = vadd.f32 %v483_v52, %v277_v59 }
  0xb4   : > { %v292_v2 = vadd.f32 %v485_v53, %v291_v62 }
  0xb5   : > { %v282_v3 = vsel %vm281_vm3, %v483_v52, %v278_v0 }
  0xb6   : > { %v287_v5 = vsel %vm284_vm5, %v286_v1, %v282_v3  ;;  %v296_v6 = vsel %vm295_vm6, %v485_v53, %v292_v2 }
  0xb7   : > { %v301_v7 = vsel %vm298_vm7, %v300_v4, %v296_v6  ;;  %302 = vst [vmem:[%s188_s21] sm:$0xff] %v287_v5 }
  0xb8   : > { %303 = vst [vmem:[%s188_s21 + $0x8] sm:$0xff] %v301_v7 }
  0xb9   : > { %513 = shalt.err (!%p510_p5)
}
  0xba   : > { %414 = dma.vmem_to_hbm [thread:$0]  (%p630_p4), %s321_s23, 256, %s323_s15, %s305_s26  }
  0xbb PF: > { %p420_p6 = scmp.ge.s32.totalorder %s564_s17, 2  ;;  %s334_s7 = sand.u32 1, %s544_s12  }
  0xbc   : > { %s335_s8 = scalar_lea.sflag [#allocation3], %s334_s7 }
  0xbd   : > { %p417_p7 = pnand %p420_p6, %p637_p8 }
  0xbf   : > { %p418_p9 = pneg %p417_p7 }
  0xc1   : > { %539 = dma.done.wait (%p418_p9), %s335_s8, 256  }
  0xc2   : > { %541 = vsyncadd (%p418_p9), %s335_s8, 4294967040  ;;  %s16_s17 = sadd.s32 1, %s564_s17   ;;  %s703_s12 = smov %s548_s13 }
  0xc3   : > { %p13_p10 = scmp.ge.s32.totalorder %s16_s17, 4   ;;  %s704_s13 = smov %s552_s14 }
  0xc4   : > { %s705_s14 = smov %s643_s25  ;;  %s706_s15 = smov %s560_s16 }
  0xc5   : > { %s707_s16 = smov %s709_s20  ;;  %15 = sbr.rel (!%p13_p10) target bundleno = 4 (0x4), region = 67 }
  0xca   :  { %341 = vsyncpa [#allocation3], 1 }
  0xcb   :  { %343 = vsyncpa [#allocation3 + $0x1], 1 }

</bundles_post_ra>
